<compile_context>
chip_gen: v7x
topology: tpu7x:2x2x1
jax: 0.10.0
libtpu: 0.0.40
codegen_flags: <defaults>
</compile_context>

<pallas_src>
import functools

import jax
import jax.numpy as jnp
from jax.experimental import pallas as pl
from jax.experimental.pallas import tpu as pltpu

LANES = 128
MAX_CHUNK_ROWS = 512      # rows per in-kernel reduction chunk (keeps temps small)
SMALL_ROWS_GUARD = 256    # don't split tiny problems across TensorCores


def _cdiv(a, b):
    return -(-a // b)


def _round_up(a, b):
    return _cdiv(a, b) * b


def _row_align(dtype):
    # Sublane alignment for the second-to-last block dim: 8/16/32 rows for
    # 4/2/1-byte dtypes.
    return {4: 8, 2: 16, 1: 32}.get(jnp.dtype(dtype).itemsize, 8)


def _vmem_capacity_bytes():
    try:
        v = getattr(pltpu.get_tpu_info(), "vmem_capacity_bytes", None)
        if v:
            return int(v)
    except Exception:
        pass
    return 64 << 20   # conservative fallback (v7x per-core VMEM)


def _tile_rows_cap():
    vmem = _vmem_capacity_bytes()
    if vmem >= (100 << 20):   # v5e / v6e: 128 MiB physical VMEM
        return 8192
    if vmem >= (48 << 20):    # v7x: 64 MiB
        return 4096
    return 2048


def _num_tensorcores():
    # Best-effort TensorCore count (2 on v7x, 1 on v5e/v6e).  Only trust fields
    # that unambiguously mean TensorCores; default 1 is always correct.
    try:
        info = pltpu.get_tpu_info()
        for name in ("num_tensorcores", "tensorcores_per_chip", "num_tensor_cores"):
            v = getattr(info, name, None)
            if isinstance(v, int) and v >= 1:
                return min(v, 2)
    except Exception:
        pass
    return 1


def _focal_loss_kernel(pred_ref, target_ref, out_ref, *, alpha, gamma,
                       tile_rows, chunk_rows, num_chunks, blocks_per_partial,
                       n_full_rows, n_rem, apply_mask, hard_targets, two_axes):
    if two_axes:
        part = pl.program_id(0)
        blk = pl.program_id(1)
        global_block = part * blocks_per_partial + blk
    else:
        blk = pl.program_id(0)
        global_block = blk

    @pl.when(blk == 0)
    def _():
        out_ref[...] = jnp.zeros_like(out_ref)

    block_row0 = global_block * tile_rows

    if apply_mask:
        # Hoisted loop-invariant iotas (JAX does not CSE these inside the loop).
        row_iota = jax.lax.broadcasted_iota(jnp.int32, (chunk_rows, LANES), 0)
        lane_iota = jax.lax.broadcasted_iota(jnp.int32, (chunk_rows, LANES), 1)

    def chunk_body(k, acc):
        r0 = pl.multiple_of(k * chunk_rows, chunk_rows)
        x = pred_ref[pl.ds(r0, chunk_rows), :].astype(jnp.float32)
        y = target_ref[pl.ds(r0, chunk_rows), :].astype(jnp.float32)

        # Numerically stable BCE-with-logits (matches torch.nn.BCEWithLogitsLoss):
        #   ce = max(x, 0) - x*y + log1p(exp(-|x|))
        e = jnp.exp(-jnp.abs(x))                            # EUP #1 (reused below)
        ce = jnp.maximum(x, 0.0) - x * y + jnp.log1p(e)     # EUP #2

        if hard_targets:
            # Exact rewrite of p_t = exp(-ce) for y in {0,1}: p_t = sigmoid((2y-1)x),
            # reusing e so no third transcendental is needed (VALU has slack).
            z = (2.0 * y - 1.0) * x
            p_t = jnp.where(z >= 0.0, 1.0, e) / (1.0 + e)
        else:
            # Soft/float targets: keep the module's literal p_t = exp(-ce).  EUP #3.
            p_t = jnp.exp(-ce)

        one_minus_pt = 1.0 - p_t
        g = float(gamma)
        if g == 2.0:
            focal = one_minus_pt * one_minus_pt             # default gamma: no pow
        elif g.is_integer() and g >= 0:
            focal = one_minus_pt ** int(g)                  # integer_pow
        else:
            focal = one_minus_pt ** g                       # general float pow
        # NOTE: constant alpha weighting, exactly as in the reference module
        # (not the alpha_t = alpha*y + (1-alpha)*(1-y) torchvision variant).
        loss = alpha * focal * ce

        if apply_mask:
            grow = block_row0 + r0 + row_iota
            valid = (grow < n_full_rows) | ((grow == n_full_rows) & (lane_iota < n_rem))
            loss = jnp.where(valid, loss, 0.0)

        # VPU-only partial reduce (chunk_rows,128) -> (8,128) into a 1-vreg carry.
        return acc + loss.reshape(chunk_rows // 8, 8, LANES).sum(axis=0)

    acc = jax.lax.fori_loop(0, num_chunks, chunk_body,
                            jnp.zeros((8, LANES), jnp.float32))
    out_ref[...] += acc


def focal_loss(pred, target, *, gamma=2.0, alpha=0.25, reduction="mean",
               hard_targets=None, num_partials=None):
    """Pallas TPU focal loss (forward), matching the PyTorch module:

        ce   = BCEWithLogitsLoss(reduction='none')(pred, target)
        p_t  = exp(-ce)
        loss = alpha * (1 - p_t)**gamma * ce  -> mean() / sum()

    `hard_targets=None` infers from the target dtype: integer/bool targets use
    an exact 2-transcendental path; float targets use the literal exp(-ce) so
    soft labels keep the module semantics.  Returns a float32 scalar.
    """
    assert pred.shape == target.shape, (pred.shape, target.shape)
    if reduction not in ("mean", "sum"):
        # TODO(synk): reduction='none' (full elementwise output map) not implemented;
        # only the scalar reductions of the reference module are supported.
        raise NotImplementedError("reduction='none' not implemented")

    n = pred.size
    assert n > 0, "empty input"

    tdt = jnp.dtype(target.dtype)
    if tdt == jnp.dtype(bool):
        target = target.astype(jnp.int8)   # avoid i1 kernel I/O; cheap one-off cast
        tdt = jnp.dtype(jnp.int8)
    if hard_targets is None:
        hard_targets = bool(jnp.issubdtype(tdt, jnp.integer))

    # ---- Layout: flatten to a lane-dense (rows, 128) view.  Copy-free whenever
    # n is a multiple of 128 (the wrapper-side pad copy was the big perf bug).
    align = max(_row_align(pred.dtype), _row_align(tdt))
    rows = max(_cdiv(n, LANES), align)
    padded_n = rows * LANES
    pred_f = pred.reshape(-1)
    target_f = target.reshape(-1)
    if padded_n != n:
        # Only when n % 128 != 0 (or tiny inputs): pad < 128 elems / one aligned
        # block.  Padded values are masked out in-kernel, so zeros are fine.
        pred_f = jnp.pad(pred_f, (0, padded_n - n))
        target_f = jnp.pad(target_f, (0, padded_n - n))
    pred2 = pred_f.reshape(rows, LANES)
    target2 = target_f.reshape(rows, LANES)

    # ---- Per-generation tiling / TensorCore split.
    nparts = int(num_partials) if num_partials is not None else _num_tensorcores()
    nparts = max(nparts, 1)
    if rows < nparts * SMALL_ROWS_GUARD:
        nparts = 1

    cap = _tile_rows_cap()
    rows_per_part = _cdiv(rows, nparts)
    if rows_per_part <= MAX_CHUNK_ROWS:
        tile_rows = _round_up(rows_per_part, align)
        chunk_rows = tile_rows
    else:
        tile_rows = min(cap, _round_up(rows_per_part, MAX_CHUNK_ROWS))
        chunk_rows = MAX_CHUNK_ROWS
    num_chunks = tile_rows // chunk_rows

    num_row_blocks = _cdiv(rows, tile_rows)
    if nparts > 1:
        blocks_per_partial = _cdiv(num_row_blocks, nparts)
        total_blocks = nparts * blocks_per_partial
    else:
        blocks_per_partial = num_row_blocks
        total_blocks = num_row_blocks
    covered_rows = total_blocks * tile_rows
    apply_mask = (covered_rows * LANES) != n

    kernel = functools.partial(
        _focal_loss_kernel,
        alpha=float(alpha), gamma=float(gamma),
        tile_rows=tile_rows, chunk_rows=chunk_rows, num_chunks=num_chunks,
        blocks_per_partial=blocks_per_partial,
        n_full_rows=n // LANES, n_rem=n % LANES,
        apply_mask=apply_mask, hard_targets=bool(hard_targets),
        two_axes=(nparts > 1))

    last_block = num_row_blocks - 1
    if nparts == 1:
        grid = (num_row_blocks,)
        in_spec = pl.BlockSpec((tile_rows, LANES), lambda i: (i, 0))
        out_spec = pl.BlockSpec((8, LANES), lambda i: (0, 0))
        out_shape = jax.ShapeDtypeStruct((8, LANES), jnp.float32)
        dim_sem = ("arbitrary",)
    else:
        def in_map(c, i):
            # Clamp so a fully out-of-range trailing block re-reads valid rows
            # (its contribution is masked to zero) instead of DMA-ing past the end.
            return (jnp.minimum(c * blocks_per_partial + i, last_block), 0)
        grid = (nparts, blocks_per_partial)
        in_spec = pl.BlockSpec((tile_rows, LANES), in_map)
        out_spec = pl.BlockSpec((8, LANES), lambda c, i: (c, 0))
        out_shape = jax.ShapeDtypeStruct((nparts * 8, LANES), jnp.float32)
        # Shard the partials axis across TensorCores (v7x); the block axis stays
        # sequential so the per-partial output block is a VMEM accumulator.
        dim_sem = (pltpu.CORE_PARALLEL, pltpu.ARBITRARY)

    itembytes = jnp.dtype(pred.dtype).itemsize + tdt.itemsize
    vmem_limit = int(2 * tile_rows * LANES * itembytes + (16 << 20))
    cost = pl.CostEstimate(
        flops=20 * covered_rows * LANES,
        transcendentals=(2 if hard_targets else 3) * covered_rows * LANES,
        bytes_accessed=covered_rows * LANES * itembytes + nparts * 8 * LANES * 4)

    partials = pl.pallas_call(
        kernel,
        out_shape=out_shape,
        grid_spec=pltpu.PrefetchScalarGridSpec(
            num_scalar_prefetch=0,
            grid=grid,
            in_specs=[in_spec, in_spec],
            out_specs=out_spec),
        compiler_params=pltpu.CompilerParams(
            dimension_semantics=dim_sem,
            vmem_limit_bytes=vmem_limit),
        cost_estimate=cost,
    )(pred2, target2)

    total = jnp.sum(partials)   # tiny (nparts*8, 128) epilogue reduction
    if reduction == "mean":
        return total / jnp.float32(n)
    return total


def _focal_loss_ref(pred, target, gamma=2.0, alpha=0.25, reduction="mean"):
    x = pred.astype(jnp.float32)
    y = target.astype(jnp.float32)
    ce = jnp.maximum(x, 0.0) - x * y + jnp.log1p(jnp.exp(-jnp.abs(x)))
    p_t = jnp.exp(-ce)
    loss = alpha * (1.0 - p_t) ** gamma * ce
    return jnp.mean(loss) if reduction == "mean" else jnp.sum(loss)


if __name__ == "__main__":
    key = jax.random.PRNGKey(0)
    k1, k2, k3 = jax.random.split(key, 3)

    # 1) Module-default config: f32 preds, float {0,1} targets, mean reduction.
    shape = (2, 4, 16, 16)
    pred = jax.random.normal(k1, shape, dtype=jnp.float32)
    target = (jax.random.uniform(k2, shape) > 0.5).astype(jnp.float32)
    out = jax.block_until_ready(focal_loss(pred, target, reduction="mean"))
    ref = _focal_loss_ref(pred, target, reduction="mean")
    assert jnp.allclose(out, ref, rtol=1e-5, atol=1e-6), (out, ref)

    # 2) Ragged (non-128-multiple) size, sum reduction, int8 hard targets.
    shape2 = (3, 5, 7, 11)
    pred2 = jax.random.normal(k3, shape2, dtype=jnp.float32)
    target2 = (jax.random.uniform(k2, shape2) > 0.5).astype(jnp.int8)
    out2 = jax.block_until_ready(focal_loss(pred2, target2, reduction="sum"))
    ref2 = _focal_loss_ref(pred2, target2.astype(jnp.float32), reduction="sum")
    assert jnp.allclose(out2, ref2, rtol=1e-5, atol=1e-4), (out2, ref2)

    # 3) Narrow-dtype streams (bf16 preds + int8 targets), mean reduction.
    pred3 = pred.astype(jnp.bfloat16)
    target3 = target.astype(jnp.int8)
    out3 = jax.block_until_ready(focal_loss(pred3, target3, reduction="mean"))
    ref3 = _focal_loss_ref(pred3.astype(jnp.float32), target3.astype(jnp.float32),
                           reduction="mean")
    assert jnp.allclose(out3, ref3, rtol=1e-4, atol=1e-5), (out3, ref3)

    print("KERNEL_OK")
</pallas_src>

<mosaic_0001>
module attributes {stable_mosaic.version = 11 : i64} {
  func.func @_focal_loss_kernel(%arg0: i32, %arg1: memref<16x128xf32, #tpu.memory_space<vmem>>, %arg2: memref<16x128xf32, #tpu.memory_space<vmem>>, %arg3: memref<8x128xf32, #tpu.memory_space<vmem>>) attributes {dimension_semantics = [#tpu.dimension_semantics<arbitrary>], iteration_bounds = array<i64: 1>, scalar_prefetch = 0 : i64, scratch_operands = 0 : i64, tpu.core_type = #tpu.core_type<tc>, window_params = [{transform_indices = @transform_0, window_bounds = array<i64: 16, 128>}, {transform_indices = @transform_1, window_bounds = array<i64: 16, 128>}, {pipeline_mode = #tpu.pipeline_mode<synchronous>, transform_indices = @transform_2, window_bounds = array<i64: 8, 128>}]} {
    %c0_i32 = arith.constant 0 : i32
    %0 = arith.cmpi eq, %arg0, %c0_i32 : i32
    %1 = arith.extui %0 : i1 to i32
    %c0_i32_0 = arith.constant 0 : i32
    %2 = arith.cmpi ne, %1, %c0_i32_0 : i32
    scf.if %2 {
      %cst_13 = arith.constant 0.000000e+00 : f32
      %35 = vector.broadcast %cst_13 : f32 to vector<8x128xf32>
      %c0_14 = arith.constant 0 : index
      %c0_15 = arith.constant 0 : index
      %36 = vector.load %arg3[%c0_14, %c0_15] : memref<8x128xf32, #tpu.memory_space<vmem>>, vector<8x128xf32>
      tpu.vector_store %arg3[%c0_14, %c0_15], %35 {strides = array<i32>} : memref<8x128xf32, #tpu.memory_space<vmem>>, vector<8x128xf32>,
    } else {
    }
    %cst = arith.constant 0.000000e+00 : f32
    %3 = vector.broadcast %cst : f32 to vector<8x128xf32>
    %c0_i32_1 = arith.constant 0 : i32
    %c16_i32 = arith.constant 16 : i32
    %4 = arith.muli %c0_i32_1, %c16_i32 : i32
    %5 = tpu.assume_multiple %4, 16 : i32
    %6 = arith.index_cast %5 : i32 to index
    %c0 = arith.constant 0 : index
    %7 = vector.load %arg1[%6, %c0] : memref<16x128xf32, #tpu.memory_space<vmem>>, vector<16x128xf32>
    %8 = arith.index_cast %5 : i32 to index
    %c0_2 = arith.constant 0 : index
    %9 = vector.load %arg2[%8, %c0_2] : memref<16x128xf32, #tpu.memory_space<vmem>>, vector<16x128xf32>
    %10 = math.absf %7 : vector<16x128xf32>
    %cst_3 = arith.constant 0.000000e+00 : f32
    %11 = vector.broadcast %cst_3 : f32 to vector<16x128xf32>
    %12 = arith.subf %11, %10 : vector<16x128xf32>
    %13 = math.exp %12 : vector<16x128xf32>
    %cst_4 = arith.constant 0.000000e+00 : f32
    %14 = vector.broadcast %cst_4 : f32 to vector<16x128xf32>
    %15 = arith.maximumf %7, %14 : vector<16x128xf32>
    %16 = arith.mulf %7, %9 : vector<16x128xf32>
    %17 = arith.subf %15, %16 : vector<16x128xf32>
    %18 = math.log1p %13 : vector<16x128xf32>
    %19 = arith.addf %17, %18 : vector<16x128xf32>
    %cst_5 = arith.constant 0.000000e+00 : f32
    %20 = vector.broadcast %cst_5 : f32 to vector<16x128xf32>
    %21 = arith.subf %20, %19 : vector<16x128xf32>
    %22 = math.exp %21 : vector<16x128xf32>
    %cst_6 = arith.constant 1.000000e+00 : f32
    %23 = vector.broadcast %cst_6 : f32 to vector<16x128xf32>
    %24 = arith.subf %23, %22 : vector<16x128xf32>
    %25 = arith.mulf %24, %24 : vector<16x128xf32>
    %cst_7 = arith.constant 2.500000e-01 : f32
    %26 = vector.broadcast %cst_7 : f32 to vector<16x128xf32>
    %27 = arith.mulf %26, %25 : vector<16x128xf32>
    %28 = arith.mulf %27, %19 : vector<16x128xf32>
    %29 = vector.shape_cast %28 : vector<16x128xf32> to vector<2x8x128xf32>
    %cst_8 = arith.constant dense<0.000000e+00> : vector<8x128xf32>
    %30 = vector.multi_reduction <add>, %29, %cst_8 [0] : vector<2x8x128xf32> to vector<8x128xf32>
    %31 = arith.addf %3, %30 : vector<8x128xf32>
    %c1_i32 = arith.constant 1 : i32
    %c0_9 = arith.constant 0 : index
    %c0_10 = arith.constant 0 : index
    %32 = vector.load %arg3[%c0_9, %c0_10] : memref<8x128xf32, #tpu.memory_space<vmem>>, vector<8x128xf32>
    %33 = arith.addf %32, %31 : vector<8x128xf32>
    %c0_11 = arith.constant 0 : index
    %c0_12 = arith.constant 0 : index
    %34 = vector.load %arg3[%c0_11, %c0_12] : memref<8x128xf32, #tpu.memory_space<vmem>>, vector<8x128xf32>
    tpu.vector_store %arg3[%c0_11, %c0_12], %33 {strides = array<i32>} : memref<8x128xf32, #tpu.memory_space<vmem>>, vector<8x128xf32>,
    return
  }
  func.func @transform_0(%arg0: i32) -> (i32, i32) {
    %c0_i32 = arith.constant 0 : i32
    %c0_i32_0 = arith.constant 0 : i32
    return %arg0, %c0_i32 : i32, i32
  }
  func.func @transform_1(%arg0: i32) -> (i32, i32) {
    %c0_i32 = arith.constant 0 : i32
    %c0_i32_0 = arith.constant 0 : i32
    return %arg0, %c0_i32 : i32, i32
  }
  func.func @transform_2(%arg0: i32) -> (i32, i32) {
    %c0_i32 = arith.constant 0 : i32
    %c0_i32_0 = arith.constant 0 : i32
    %c0_i32_1 = arith.constant 0 : i32
    return %c0_i32, %c0_i32_0 : i32, i32
  }
}

</mosaic_0001>

<bundles_post_ra>
// kernel: tpu_custom_call.1
= control target key start
LH: loop header
LB: loop body
LE: loop exit
PB: predicated region body
PF: predicated region fallthrough
CT: control target
= control target key end

     0   :  { %7 = vsyncpa [#allocation3], 0  ;;  %s264_s0 = inlined_call_operand.hbm [shape: f32[16,128], index: 0, kind: input, shape index: {}]   ;;  %s265_s1 = inlined_call_operand.hbm [shape: f32[16,128], index: 1, kind: input, shape index: {}]   ;;  %s266_s2 = inlined_call_operand.hbm [shape: f32[8,128], index: 2, kind: output, shape index: {}]  }
   0x1   :  { %8 = vsyncpa [#allocation6], 0 }
   0x2   :  { %9 = vsyncpa [#allocation4], 0  ;;  %s208_s9 = smov [#allocation2]   ;;  %s136_s13 = scalar_lea.hbm %s264_s0, 256 }
   0x3   :  { %s15_s10 = sshll.u32 %s208_s9, 4  ;;  %p137_p0 = scmp.ne.s32.totalorder %s264_s0, %s136_s13  ;;  %s16_s10 = int_to_ptr.vmem [resolvable:$true] %s15_s10 }
   0x4   :  { %p140_p1 = scmp.lt.u32.totalorder %s136_s13, %s264_s0 }
   0x6   :  { %p142_p2 = pnand %p140_p1, %p137_p0 }
   0x8   :  { %145 = shalt.err (!%p142_p2)
}
   0x9   :  { %s146_s18 = scalar_lea.vmem %s16_s10, 256  ;;  %p151_p4 = scmp.lt.s32.totalorder %s16_s10, %s16_s10 }
   0xa   :  { %p147_p3 = scmp.ne.s32.totalorder %s16_s10, %s146_s18  ;;  %p152_p5 = scmp.lt.s32.totalorder %s146_s18, %s146_s18 }
   0xc   :  { %p153_p6 = por %p152_p5, %p151_p4 }
   0xe   :  { %p154_p7 = pnand %p153_p6, %p147_p3 }
  0x10   :  { %157 = shalt.err (!%p154_p7)
}
  0x11   :  { %s209_s19 = smov 128   ;;  %s210_s20 = smov 8  }
  0x12   :  { %21 = dma.hbm_to_vmem [thread:$0]  %s264_s0, 256, %s16_s10, [#allocation3], %s209_s19, %s209_s19, %s210_s20  }
  0x13   :  { %s211_s23 = smov [#allocation5]   ;;  %s158_s27 = scalar_lea.hbm %s265_s1, 256 }
  0x14   :  { %s27_s24 = sshll.u32 %s211_s23, 4  ;;  %p159_p8 = scmp.ne.s32.totalorder %s265_s1, %s158_s27  ;;  %s28_s24 = int_to_ptr.vmem [resolvable:$true] %s27_s24 }
  0x15   :  { %p162_p9 = scmp.lt.u32.totalorder %s158_s27, %s265_s1 }
  0x17   :  { %p164_p10 = pnand %p162_p9, %p159_p8 }
  0x19   :  { %167 = shalt.err (!%p164_p10)
}
  0x1a   :  { %s168_s4 = scalar_lea.vmem %s28_s24, 256  ;;  %p173_p12 = scmp.lt.s32.totalorder %s28_s24, %s28_s24 }
  0x1b   :  { %p169_p11 = scmp.ne.s32.totalorder %s28_s24, %s168_s4  ;;  %p174_p13 = scmp.lt.s32.totalorder %s168_s4, %s168_s4 }
  0x1d   :  { %p175_p0 = por %p174_p13, %p173_p12 }
  0x1f   :  { %p176_p1 = pnand %p175_p0, %p169_p11 }
  0x21   :  { %179 = shalt.err (!%p176_p1)
}
  0x22   :  { %33 = dma.hbm_to_vmem [thread:$0]  %s265_s1, 256, %s28_s24, [#allocation6], %s209_s19, %s209_s19, %s210_s20  }
  0x23   :  { %202 = dma.done.wait [#allocation3], 256  }
  0x24   :  { %203 = vsyncadd [#allocation3], 4294967040 }
  0x25   :  { %204 = dma.done.wait [#allocation6], 256  }
  0x26   :  { %205 = vsyncadd [#allocation6], 4294967040  ;;  %v45_v0 = vld [vmem:[#allocation2] sm:$0xff]  ;;  %v46_v1 = vld [vmem:[#allocation2 + $0x8] sm:$0xff]  ;;  %s212_s1 = smov [#allocation7]  }
  0x27   :  { %v49_v2 = vand.u32 2147483647, %v45_v0  ;;  %v50_v3 = vand.u32 2147483647, %v46_v1  ;;  %v47_v14 = vld [vmem:[#allocation5] sm:$0xff]  ;;  %v48_v15 = vld [vmem:[#allocation5 + $0x8] sm:$0xff] }
  0x28   :  { %v57_v17 = vmax.f32 %v45_v0, 0.0  ;;  %v59_v18 = vmul.f32 %v47_v14, %v45_v0  ;;  %v58_v21 = vmax.f32 %v46_v1, 0.0  ;;  %v60_v22 = vmul.f32 %v48_v15, %v46_v1  ;;  %s108_s6 = sshll.u32 %s212_s1, 4  ;;  %s109_s6 = int_to_ptr.vmem [resolvable:$true] %s108_s6 }
  0x29   :  { %v51_v4 = vsub.f32 0.0, %v49_v2  ;;  %v52_v5 = vsub.f32 0.0, %v50_v3  ;;  %s180_s7 = scalar_lea.vmem %s109_s6, 128  ;;  %p185_p3 = scmp.lt.s32.totalorder %s109_s6, %s109_s6 }
  0x2a   :  { %v61_v26 = vsub.f32 %v57_v17, %v59_v18  ;;  %v62_v29 = vsub.f32 %v58_v21, %v60_v22  ;;  %p181_p2 = scmp.ne.s32.totalorder %s109_s6, %s180_s7  ;;  %p186_p4 = scmp.lt.s32.totalorder %s180_s7, %s180_s7 }
  0x2b   :  { %v53_v6 = vmul.f32 1.442695, %v51_v4  ;;  %v55_v7 = vmul.f32 1.442695, %v52_v5 }
  0x2c   :  { %p187_p5 = por %p186_p4, %p185_p3 }
  0x2d   :  { %124 = vpow2.f32 %v53_v6 }
  0x2e   :  { %126 = vpow2.f32 %v55_v7  ;;  %p188_p6 = pnand %p187_p5, %p181_p2 }
  0x37   :  { %v125_v8 = vpop.eup %124 }
  0x38   :  { %v127_v9 = vpop.eup %126  ;;  %v63_v10 = vadd.f32 1.0, %v125_v8  ;;  %v66_v12 = vmul.f32 -0.5, %v125_v8  ;;  %v69_v19 = vand.u32 2147483647, %v125_v8 }
  0x39   :  { %v72_v11 = vadd.f32 1.0, %v127_v9  ;;  %v75_v13 = vmul.f32 -0.5, %v127_v9  ;;  %v78_v23 = vand.u32 2147483647, %v127_v9 }
  0x3a   :  { %128 = vlog2.f32 %v63_v10  ;;  %v67_v16 = vadd.f32 1.0, %v66_v12  ;;  %vm70_vm0 = vcmp.lt.f32.partialorder %v69_v19, 0.0004427343 }
  0x3b   :  { %130 = vlog2.f32 %v72_v11  ;;  %v76_v20 = vadd.f32 1.0, %v75_v13  ;;  %vm79_vm1 = vcmp.lt.f32.partialorder %v78_v23, 0.0004427343 }
  0x3c   :  { %v68_v24 = vmul.f32 %v125_v8, %v67_v16 }
  0x3d   :  { %v77_v27 = vmul.f32 %v127_v9, %v76_v20 }
  0x44   :  { %v129_v25 = vpop.eup %128 }
  0x45   :  { %v131_v28 = vpop.eup %130  ;;  %v65_v30 = vmul.f32 0.6931472, %v129_v25 }
  0x46   :  { %v74_v31 = vmul.f32 0.6931472, %v131_v28 }
  0x47   :  { %v71_v32 = vsel %vm70_vm0, %v68_v24, %v65_v30 }
  0x48   :  { %v80_v33 = vsel %vm79_vm1, %v77_v27, %v74_v31  ;;  %v81_v34 = vadd.f32 %v71_v32, %v61_v26 }
  0x49   :  { %v82_v35 = vadd.f32 %v80_v33, %v62_v29 }
  0x4a   :  { %v83_v36 = vsub.f32 0.0, %v81_v34 }
  0x4b   :  { %v84_v37 = vsub.f32 0.0, %v82_v35 }
  0x4c   :  { %v85_v38 = vmul.f32 1.442695, %v83_v36 }
  0x4d   :  { %v87_v39 = vmul.f32 1.442695, %v84_v37 }
  0x4e   :  { %132 = vpow2.f32 %v85_v38 }
  0x4f   :  { %134 = vpow2.f32 %v87_v39 }
  0x58   :  { %v133_v40 = vpop.eup %132 }
  0x59   :  { %v135_v41 = vpop.eup %134  ;;  %v89_v42 = vsub.f32 1.0, %v133_v40 }
  0x5a   :  { %v90_v43 = vsub.f32 1.0, %v135_v41 }
  0x5b   :  { %v91_v44 = vmul.f32 %v89_v42, %v89_v42 }
  0x5c   :  { %v92_v45 = vmul.f32 %v90_v43, %v90_v43 }
  0x5d   :  { %v93_v46 = vmul.f32 0.25, %v91_v44 }
  0x5e   :  { %v94_v47 = vmul.f32 0.25, %v92_v45 }
  0x5f   :  { %v95_v48 = vmul.f32 %v93_v46, %v81_v34 }
  0x60   :  { %v96_v49 = vmul.f32 %v94_v47, %v82_v35 }
  0x62   :  { %v97_v50 = vadd.f32 %v96_v49, %v95_v48 }
  0x64   :  { %101 = vst [vmem:[#allocation7] sm:$0xff] %v97_v50 }
  0x65   :  { %191 = shalt.err (!%p188_p6)
}
  0x66   :  { %s192_s10 = scalar_lea.hbm %s266_s2, 128 }
  0x67   :  { %p193_p7 = scmp.ne.s32.totalorder %s266_s2, %s192_s10  ;;  %p196_p8 = scmp.lt.u32.totalorder %s192_s10, %s266_s2 }
  0x69   :  { %p198_p9 = pnand %p196_p8, %p193_p7 }
  0x6b   :  { %201 = shalt.err (!%p198_p9)
}
  0x6c   :  { %111 = dma.vmem_to_hbm [thread:$0]  %s109_s6, 128, %s266_s2, [#allocation4]  }
  0x6d   :  { %206 = dma.done.wait [#allocation4], 128  }
  0x6e   :  { %207 = vsyncadd [#allocation4], 4294967168 }
  0x6f   :  { %115 = vsyncpa [#allocation3], 1 }
  0x70   :  { %116 = vsyncpa [#allocation6], 1 }
  0x71   :  { %117 = vsyncpa [#allocation4], 1 }

</bundles_post_ra>
